<compile_context>
chip_gen: v7x
topology: tpu7x:2x2x1
jax: 0.10.0
libtpu: 0.0.40
codegen_flags: <defaults>
</compile_context>

<pallas_src>
import functools

import jax
import jax.numpy as jnp
from jax.experimental import pallas as pl
from jax.experimental.pallas import tpu as pltpu

_HIDDEN = 32


def _round_up(x, m):
    return ((x + m - 1) // m) * m


def _dann_loss_kernel(x_ref, w1_ref, b1_ref, w2_ref, b2_ref, y_ref,
                      out_ref, acc_ref, *, tile_n, tiles_per_split, n_true,
                      needs_mask):
    s = pl.program_id(0)      # megacore split axis ("parallel")
    i = pl.program_id(1)      # N-tile reduction axis ("arbitrary")

    @pl.when(i == 0)
    def _():
        acc_ref[...] = jnp.zeros_like(acc_ref)

    # Linear(D, 32) on the MXU; w1 was cast to the feature dtype in the
    # wrapper, so this is a native-dtype matmul with f32 accumulation.
    x = x_ref[...]                                              # (TILE_N, D)
    h = jnp.dot(x, w1_ref[...], preferred_element_type=jnp.float32)
    h = jnp.maximum(h + b1_ref[...], 0.0)                       # ReLU (TILE_N, 32)

    # Linear(32, 1): a 1-wide MXU matmul wastes the array; VPU mul + lane reduce.
    z = jnp.sum(h * w2_ref[...], axis=-1, keepdims=True) + b2_ref[0]   # (TILE_N, 1)

    y = y_ref[...]                                              # (TILE_N, 1) f32

    if needs_mask:
        # Rows past the true N (ragged last block or extra clamped grid step):
        # zero z/y before the transcendentals, then zero their contribution.
        row = jax.lax.broadcasted_iota(jnp.int32, (tile_n, 1), 0)
        global_row = (s * tiles_per_split + i) * tile_n + row
        valid = global_row < n_true
        z = jnp.where(valid, z, 0.0)
        y = jnp.where(valid, y, 0.0)
        per = jnp.maximum(z, 0.0) - z * y + jnp.log1p(jnp.exp(-jnp.abs(z)))
        per = jnp.where(valid, per, 0.0)
    else:
        per = jnp.maximum(z, 0.0) - z * y + jnp.log1p(jnp.exp(-jnp.abs(z)))

    # Accumulate per-row losses; reduce to a scalar only once, at the end.
    acc_ref[...] += per

    @pl.when(i == pl.num_programs(1) - 1)
    def _():
        out_ref[...] = jnp.sum(acc_ref[...], axis=0, keepdims=True)


def _auto_tile_n(n_rows, d, itemsize):
    # Keep double-buffered feature tiles within ~24 MiB so the full working
    # set (labels pad to 128 lanes, weights, accumulator) fits v7x's 64 MiB
    # physical VMEM with headroom; 1024-2048 rows amortizes the ~0.35 us
    # per-grid-step overhead for typical D.
    budget = 24 << 20
    cap = max(8, budget // (2 * d * itemsize))
    return int(min(2048, cap, _round_up(n_rows, 8)))


def _auto_num_splits(total_tiles):
    # Only v7x has 2 TensorCores per chip; on v5e/v6e a "parallel" split is
    # just a serial outer loop with extra accumulator/writeback overhead.
    try:
        kind = jax.devices()[0].device_kind.lower()
    except Exception:
        kind = ""
    if "v7" in kind and total_tiles >= 2:
        return 2
    return 1


def domain_adversarial_loss(features, domain_labels, params, *,
                            tile_n=None, num_splits=None):
    """Mean BCE-with-logits of Linear(D,32)->ReLU->Linear(32,1) over features."""
    n_true, d = features.shape
    feat_itemsize = jnp.dtype(features.dtype).itemsize

    # Match w1 to the feature dtype (native-dtype MXU matmul, f32 accumulate).
    w1 = params["w1"].astype(features.dtype)
    b1_row = params["b1"].astype(jnp.float32).reshape(1, _HIDDEN)
    w2_row = params["w2"].astype(jnp.float32).reshape(1, _HIDDEN)
    b2_s = params["b2"].astype(jnp.float32).reshape(1)

    y = domain_labels.astype(jnp.float32).reshape(n_true, 1)

    # Tiny-N guard only: blocks need >= 8 sublanes.  No full-matrix padding.
    if n_true < 8:
        pad = 8 - n_true
        features = jnp.pad(features, ((0, pad), (0, 0)))
        y = jnp.pad(y, ((0, pad), (0, 0)))
    n_rows = features.shape[0]

    if tile_n is None:
        tile_n = _auto_tile_n(n_rows, d, feat_itemsize)
    tile_n = int(tile_n)
    if tile_n >= n_rows:
        tile_n = n_rows                        # single block == full dim (always legal)
    else:
        tile_n = max(8, (tile_n // 8) * 8)     # sublane-aligned streaming tile

    total_tiles = pl.cdiv(n_rows, tile_n)
    if num_splits is None:
        num_splits = _auto_num_splits(total_tiles)
    num_splits = max(1, min(int(num_splits), total_tiles))
    tiles_per_split = pl.cdiv(total_tiles, num_splits)

    needs_mask = (num_splits * tiles_per_split * tile_n) != n_true
    last_block = total_tiles - 1

    def stream_idx(s, i):
        t = s * tiles_per_split + i
        # Clamp so an "extra" grid step (split rounding) re-reads the last
        # valid block instead of DMAing out of bounds; the in-kernel row mask
        # zeroes its contribution.
        return (jnp.minimum(t, last_block), 0)

    # Streaming inputs: one block per (split, tile) grid step (double-buffered).
    feat_spec = pl.BlockSpec((tile_n, d), stream_idx)
    lab_spec = pl.BlockSpec((tile_n, 1), stream_idx)
    # Weights/biases: constant block index -> fetched once, resident across grid.
    w1_spec = pl.BlockSpec((d, _HIDDEN), lambda s, i: (0, 0))
    row_spec = pl.BlockSpec((1, _HIDDEN), lambda s, i: (0, 0))
    b2_spec = pl.BlockSpec(memory_space=pltpu.MemorySpace.SMEM)

    # VMEM budget: feature double-buffers + lane-padded (tile_n,1) label
    # double-buffers + (tile_n,1) accumulator + weights, with headroom.
    lane_pad_bytes = 128 * 4
    vmem_bytes = (2 * tile_n * d * feat_itemsize
                  + 2 * tile_n * lane_pad_bytes
                  + tile_n * lane_pad_bytes
                  + 2 * d * _HIDDEN * jnp.dtype(w1.dtype).itemsize
                  + 8 * _HIDDEN * lane_pad_bytes)
    vmem_limit = int(1.4 * vmem_bytes) + (2 << 20)
    vmem_limit = min(max(vmem_limit, 16 << 20), 56 << 20)

    kernel = functools.partial(
        _dann_loss_kernel, tile_n=tile_n, tiles_per_split=tiles_per_split,
        n_true=n_true, needs_mask=needs_mask)

    cost = pl.CostEstimate(
        flops=2 * n_rows * d * _HIDDEN + 8 * n_rows * _HIDDEN,
        transcendentals=2 * n_rows,
        bytes_accessed=(n_rows * d * feat_itemsize + n_rows * 4
                        + d * _HIDDEN * int(jnp.dtype(w1.dtype).itemsize)
                        + (3 * _HIDDEN + 1) * 4 + num_splits * 4),
    )

    partial_sums = pl.pallas_call(
        kernel,
        out_shape=jax.ShapeDtypeStruct((num_splits, 1), jnp.float32),
        grid_spec=pltpu.PrefetchScalarGridSpec(
            num_scalar_prefetch=0,
            grid=(num_splits, tiles_per_split),
            in_specs=[feat_spec, w1_spec, row_spec, row_spec, b2_spec, lab_spec],
            out_specs=pl.BlockSpec((1, 1), lambda s, i: (s, 0)),
            scratch_shapes=[pltpu.VMEM((tile_n, 1), jnp.float32)],
        ),
        compiler_params=pltpu.CompilerParams(
            dimension_semantics=("parallel", "arbitrary"),
            vmem_limit_bytes=vmem_limit),
        cost_estimate=cost,
    )(features, w1, b1_row, w2_row, b2_s, y)

    return jnp.sum(partial_sums) / n_true


def init_params(key, bottleneck_dim, hidden=_HIDDEN):
    """Deterministic PyTorch-Linear-style uniform init (fan_in based)."""
    k1, k2, k3, k4 = jax.random.split(key, 4)
    lim1 = 1.0 / jnp.sqrt(jnp.float32(bottleneck_dim))
    w1 = jax.random.uniform(k1, (bottleneck_dim, hidden), jnp.float32, -lim1, lim1)
    b1 = jax.random.uniform(k2, (hidden,), jnp.float32, -lim1, lim1)
    lim2 = 1.0 / jnp.sqrt(jnp.float32(hidden))
    w2 = jax.random.uniform(k3, (hidden, 1), jnp.float32, -lim2, lim2)
    b2 = jax.random.uniform(k4, (1,), jnp.float32, -lim2, lim2)
    return {"w1": w1, "b1": b1, "w2": w2, "b2": b2}


def reference_loss(features, domain_labels, params):
    h = jnp.maximum(features @ params["w1"] + params["b1"], 0.0)
    z = (h @ params["w2"] + params["b2"]).squeeze()
    y = domain_labels.astype(jnp.float32)
    per = jnp.maximum(z, 0.0) - z * y + jnp.log1p(jnp.exp(-jnp.abs(z)))
    return jnp.mean(per)


if __name__ == "__main__":
    # Case 1: matches the PyTorch module demo (bottleneck_dim=32, batch=8).
    key = jax.random.PRNGKey(0)
    k_params, k_feat = jax.random.split(key)
    params = init_params(k_params, 32)
    features = jax.random.normal(k_feat, (8, 32), dtype=jnp.float32)
    domain_labels = jnp.array([0, 1, 0, 1, 0, 1, 0, 1], dtype=jnp.int32)

    loss = jax.block_until_ready(domain_adversarial_loss(features, domain_labels, params))
    ref = reference_loss(features, domain_labels, params)
    assert jnp.allclose(loss, ref, rtol=1e-5, atol=1e-5), (loss, ref)

    # Case 2: ragged N (exercises the in-kernel row mask, no wrapper padding).
    k2p, k2f, k2l = jax.random.split(jax.random.PRNGKey(0), 3)
    params2 = init_params(k2p, 64)
    features2 = jax.random.normal(k2f, (200, 64), dtype=jnp.float32)
    labels2 = (jax.random.uniform(k2l, (200,)) > 0.5).astype(jnp.int32)

    loss2 = jax.block_until_ready(
        domain_adversarial_loss(features2, labels2, params2, tile_n=64))
    ref2 = reference_loss(features2, labels2, params2)
    assert jnp.allclose(loss2, ref2, rtol=1e-5, atol=1e-5), (loss2, ref2)

    print("KERNEL_OK")
</pallas_src>

<mosaic_0001>
module attributes {stable_mosaic.version = 11 : i64} {
  func.func @_dann_loss_kernel(%arg0: i32, %arg1: i32, %arg2: memref<8x32xf32, #tpu.memory_space<vmem>>, %arg3: memref<32x32xf32, #tpu.memory_space<vmem>>, %arg4: memref<1x32xf32, #tpu.memory_space<vmem>>, %arg5: memref<1x32xf32, #tpu.memory_space<vmem>>, %arg6: memref<1xf32, #tpu.memory_space<smem>>, %arg7: memref<8x1xf32, #tpu.memory_space<vmem>>, %arg8: memref<1x1xf32, #tpu.memory_space<vmem>>, %arg9: memref<8x1xf32, #tpu.memory_space<vmem>>) attributes {dimension_semantics = [#tpu.dimension_semantics<parallel>, #tpu.dimension_semantics<arbitrary>], iteration_bounds = array<i64: 1, 1>, scalar_prefetch = 0 : i64, scratch_operands = 1 : i64, tpu.core_type = #tpu.core_type<tc>, window_params = [{transform_indices = @transform_0, window_bounds = array<i64: 8, 32>}, {pipeline_mode = #tpu.pipeline_mode<synchronous>, transform_indices = @transform_1, window_bounds = array<i64: 32, 32>}, {pipeline_mode = #tpu.pipeline_mode<synchronous>, transform_indices = @transform_2, window_bounds = array<i64: 1, 32>}, {pipeline_mode = #tpu.pipeline_mode<synchronous>, transform_indices = @transform_3, window_bounds = array<i64: 1, 32>}, {transform_indices = @transform_4, window_bounds = array<i64: 1>}, {transform_indices = @transform_5, window_bounds = array<i64: 8, 1>}, {transform_indices = @transform_6, window_bounds = array<i64: 1, 1>}]} {
    %c0_i32 = arith.constant 0 : i32
    %0 = arith.cmpi eq, %arg1, %c0_i32 : i32
    %1 = arith.extui %0 : i1 to i32
    %c0_i32_0 = arith.constant 0 : i32
    %2 = arith.cmpi ne, %1, %c0_i32_0 : i32
    scf.if %2 {
      %cst_21 = arith.constant 0.000000e+00 : f32
      %36 = vector.broadcast %cst_21 : f32 to vector<8x1xf32>
      %c0_22 = arith.constant 0 : index
      %c0_23 = arith.constant 0 : index
      %37 = vector.load %arg9[%c0_22, %c0_23] : memref<8x1xf32, #tpu.memory_space<vmem>>, vector<8x1xf32>
      tpu.vector_store %arg9[%c0_22, %c0_23], %36 {strides = array<i32>} : memref<8x1xf32, #tpu.memory_space<vmem>>, vector<8x1xf32>,
    } else {
    }
    %c0 = arith.constant 0 : index
    %c0_1 = arith.constant 0 : index
    %3 = vector.load %arg2[%c0, %c0_1] : memref<8x32xf32, #tpu.memory_space<vmem>>, vector<8x32xf32>
    %c0_2 = arith.constant 0 : index
    %c0_3 = arith.constant 0 : index
    %4 = vector.load %arg3[%c0_2, %c0_3] : memref<32x32xf32, #tpu.memory_space<vmem>>, vector<32x32xf32>
    %cst = arith.constant dense<0.000000e+00> : vector<8x32xf32>
    %5 = tpu.matmul %3, %4, %cst {dimension_numbers = #tpu.dot_dimension_numbers<[1], [0], [0], [1], [0, 0, 1, 1], [], []>} : vector<8x32xf32>, vector<32x32xf32>, vector<8x32xf32> -> vector<8x32xf32>
    %c0_4 = arith.constant 0 : index
    %c0_5 = arith.constant 0 : index
    %6 = vector.load %arg4[%c0_4, %c0_5] : memref<1x32xf32, #tpu.memory_space<vmem>>, vector<1x32xf32>
    %7 = vector.broadcast %6 : vector<1x32xf32> to vector<8x32xf32>
    %8 = arith.addf %5, %7 : vector<8x32xf32>
    %cst_6 = arith.constant 0.000000e+00 : f32
    %9 = vector.broadcast %cst_6 : f32 to vector<8x32xf32>
    %10 = arith.maximumf %8, %9 : vector<8x32xf32>
    %c0_7 = arith.constant 0 : index
    %c0_8 = arith.constant 0 : index
    %11 = vector.load %arg5[%c0_7, %c0_8] : memref<1x32xf32, #tpu.memory_space<vmem>>, vector<1x32xf32>
    %12 = vector.broadcast %11 : vector<1x32xf32> to vector<8x32xf32>
    %13 = arith.mulf %10, %12 : vector<8x32xf32>
    %cst_9 = arith.constant dense<0.000000e+00> : vector<8xf32>
    %14 = vector.multi_reduction <add>, %13, %cst_9 [1] : vector<8x32xf32> to vector<8xf32>
    %15 = vector.shape_cast %14 : vector<8xf32> to vector<8x1xf32>
    %c0_10 = arith.constant 0 : index
    %16 = memref.load %arg6[%c0_10] : memref<1xf32, #tpu.memory_space<smem>>
    %17 = vector.broadcast %16 : f32 to vector<8x1xf32>
    %18 = arith.addf %15, %17 : vector<8x1xf32>
    %c0_11 = arith.constant 0 : index
    %c0_12 = arith.constant 0 : index
    %19 = vector.load %arg7[%c0_11, %c0_12] : memref<8x1xf32, #tpu.memory_space<vmem>>, vector<8x1xf32>
    %cst_13 = arith.constant 0.000000e+00 : f32
    %20 = vector.broadcast %cst_13 : f32 to vector<8x1xf32>
    %21 = arith.maximumf %18, %20 : vector<8x1xf32>
    %22 = arith.mulf %18, %19 : vector<8x1xf32>
    %23 = arith.subf %21, %22 : vector<8x1xf32>
    %24 = math.absf %18 : vector<8x1xf32>
    %cst_14 = arith.constant 0.000000e+00 : f32
    %25 = vector.broadcast %cst_14 : f32 to vector<8x1xf32>
    %26 = arith.subf %25, %24 : vector<8x1xf32>
    %27 = math.exp %26 : vector<8x1xf32>
    %28 = math.log1p %27 : vector<8x1xf32>
    %29 = arith.addf %23, %28 : vector<8x1xf32>
    %c0_15 = arith.constant 0 : index
    %c0_16 = arith.constant 0 : index
    %30 = vector.load %arg9[%c0_15, %c0_16] : memref<8x1xf32, #tpu.memory_space<vmem>>, vector<8x1xf32>
    %31 = arith.addf %30, %29 : vector<8x1xf32>
    %c0_17 = arith.constant 0 : index
    %c0_18 = arith.constant 0 : index
    %32 = vector.load %arg9[%c0_17, %c0_18] : memref<8x1xf32, #tpu.memory_space<vmem>>, vector<8x1xf32>
    tpu.vector_store %arg9[%c0_17, %c0_18], %31 {strides = array<i32>} : memref<8x1xf32, #tpu.memory_space<vmem>>, vector<8x1xf32>,
    %c0_i32_19 = arith.constant 0 : i32
    %33 = arith.cmpi eq, %arg1, %c0_i32_19 : i32
    %34 = arith.extui %33 : i1 to i32
    %c0_i32_20 = arith.constant 0 : i32
    %35 = arith.cmpi ne, %34, %c0_i32_20 : i32
    scf.if %35 {
      %c0_21 = arith.constant 0 : index
      %c0_22 = arith.constant 0 : index
      %36 = vector.load %arg9[%c0_21, %c0_22] : memref<8x1xf32, #tpu.memory_space<vmem>>, vector<8x1xf32>
      %cst_23 = arith.constant dense<0.000000e+00> : vector<1xf32>
      %37 = vector.multi_reduction <add>, %36, %cst_23 [0] : vector<8x1xf32> to vector<1xf32>
      %38 = vector.shape_cast %37 : vector<1xf32> to vector<1x1xf32>
      %c0_24 = arith.constant 0 : index
      %c0_25 = arith.constant 0 : index
      %39 = vector.load %arg8[%c0_24, %c0_25] : memref<1x1xf32, #tpu.memory_space<vmem>>, vector<1x1xf32>
      tpu.vector_store %arg8[%c0_24, %c0_25], %38 {strides = array<i32>} : memref<1x1xf32, #tpu.memory_space<vmem>>, vector<1x1xf32>,
    } else {
    }
    return
  }
  func.func @transform_0(%arg0: i32, %arg1: i32) -> (i32, i32) {
    %c1_i32 = arith.constant 1 : i32
    %0 = arith.muli %arg0, %c1_i32 : i32
    %1 = arith.addi %0, %arg1 : i32
    %c0_i32 = arith.constant 0 : i32
    %2 = arith.minsi %1, %c0_i32 : i32
    %c0_i32_0 = arith.constant 0 : i32
    %c0_i32_1 = arith.constant 0 : i32
    return %2, %c0_i32_0 : i32, i32
  }
  func.func @transform_1(%arg0: i32, %arg1: i32) -> (i32, i32) {
    %c0_i32 = arith.constant 0 : i32
    %c0_i32_0 = arith.constant 0 : i32
    %c0_i32_1 = arith.constant 0 : i32
    return %c0_i32, %c0_i32_0 : i32, i32
  }
  func.func @transform_2(%arg0: i32, %arg1: i32) -> (i32, i32) {
    %c0_i32 = arith.constant 0 : i32
    %c0_i32_0 = arith.constant 0 : i32
    %c0_i32_1 = arith.constant 0 : i32
    return %c0_i32, %c0_i32_0 : i32, i32
  }
  func.func @transform_3(%arg0: i32, %arg1: i32) -> (i32, i32) {
    %c0_i32 = arith.constant 0 : i32
    %c0_i32_0 = arith.constant 0 : i32
    %c0_i32_1 = arith.constant 0 : i32
    return %c0_i32, %c0_i32_0 : i32, i32
  }
  func.func @transform_4(%arg0: i32, %arg1: i32) -> i32 {
    %c0_i32 = arith.constant 0 : i32
    %c0_i32_0 = arith.constant 0 : i32
    return %c0_i32 : i32
  }
  func.func @transform_5(%arg0: i32, %arg1: i32) -> (i32, i32) {
    %c1_i32 = arith.constant 1 : i32
    %0 = arith.muli %arg0, %c1_i32 : i32
    %1 = arith.addi %0, %arg1 : i32
    %c0_i32 = arith.constant 0 : i32
    %2 = arith.minsi %1, %c0_i32 : i32
    %c0_i32_0 = arith.constant 0 : i32
    %c0_i32_1 = arith.constant 0 : i32
    return %2, %c0_i32_0 : i32, i32
  }
  func.func @transform_6(%arg0: i32, %arg1: i32) -> (i32, i32) {
    %c0_i32 = arith.constant 0 : i32
    %c0_i32_0 = arith.constant 0 : i32
    return %arg0, %c0_i32 : i32, i32
  }
}

</mosaic_0001>

<bundles_post_ra>
// kernel: tpu_custom_call.1
= control target key start
LH: loop header
LB: loop body
LE: loop exit
PB: predicated region body
PF: predicated region fallthrough
CT: control target
= control target key end

     0   :  { %12 = vsyncpa [#allocation5], 0  ;;  %s430_s0 = inlined_call_operand.vmem [shape: f32[8,32], index: 0, kind: input, shape index: {}]   ;;  %s431_s1 = inlined_call_operand.hbm [shape: f32[32,32], index: 1, kind: input, shape index: {}]   ;;  %s432_s2 = inlined_call_operand.vmem [shape: f32[1,32], index: 2, kind: input, shape index: {}]   ;;  %s433_s3 = inlined_call_operand.vmem [shape: f32[1,32], index: 3, kind: input, shape index: {}]   ;;  %s434_s4 = inlined_call_operand.<no memory space> [shape: f32[1], index: 4, kind: input, shape index: {}]   ;;  %s435_s5 = inlined_call_operand.vmem [shape: f32[8,1], index: 5, kind: input, shape index: {}]   ;;  %s436_s6 = inlined_call_operand.hbm [shape: f32[1,1], index: 6, kind: output, shape index: {}]  }
   0x1   :  { %13 = vsyncpa [#allocation6], 0  ;;  %s346_s21 = smov [#allocation4]   ;;  %s298_s25 = scalar_lea.hbm %s431_s1, 512 }
   0x2   :  { %s31_s22 = sshll.u32 %s346_s21, 4  ;;  %p299_p0 = scmp.ne.s32.totalorder %s431_s1, %s298_s25  ;;  %s32_s22 = int_to_ptr.vmem [resolvable:$true] %s31_s22 }
   0x3   :  { %p302_p1 = scmp.lt.u32.totalorder %s298_s25, %s431_s1 }
   0x5   :  { %p304_p2 = pnand %p302_p1, %p299_p0 }
   0x7   :  { %307 = shalt.err (!%p304_p2)
}
   0x8   :  { %s308_s30 = scalar_lea.vmem %s32_s22, 512  ;;  %p313_p4 = scmp.lt.s32.totalorder %s32_s22, %s32_s22 }
   0x9   :  { %p309_p3 = scmp.ne.s32.totalorder %s32_s22, %s308_s30  ;;  %p314_p5 = scmp.lt.s32.totalorder %s308_s30, %s308_s30 }
   0xb   :  { %p315_p6 = por %p314_p5, %p313_p4 }
   0xd   :  { %p316_p7 = pnand %p315_p6, %p309_p3 }
   0xf   :  { %319 = shalt.err (!%p316_p7)
}
  0x10   :  { %s347_s7 = smov 128   ;;  %s348_s8 = smov 8  }
  0x11   :  { %37 = dma.hbm_to_vmem [thread:$0]  %s431_s1, 512, %s32_s22, [#allocation5], %s347_s7, %s347_s7, %s348_s8  }
  0x12   :  { %342 = dma.done.wait [#allocation5], 512  }
  0x13   :  { %343 = vsyncadd [#allocation5], 4294966784  ;;  %vm97_vm0 = vcmask 7168   ;;  %v349_v0 = vmov 0.0|0.0   ;;  %v350_v1 = vmov 0.0   ;;  %vm351_vm1 = vmmov 0  }
  0x14   :  { %281 = vmatprep.subr.bf16.mxu0 %v349_v0  ;;  %98 = vst.msk [vmem:[#allocation2] sm:$0xff] %vm97_vm0, %v350_v1  ;;  %278 = vmatprep.mubr.msk.f32.mxu0 %vm351_vm1, %v350_v1  ;;  %v100_v2 = vld [vmem:[#allocation4] sm:$0xff]  ;;  %v101_v3 = vld [vmem:[#allocation4 + $0x8] sm:$0xff]  ;;  %v102_v4 = vld [vmem:[#allocation4 + $0x10] sm:$0xff]  ;;  %vm111_vm2 = vcmask 261120   ;;  %v198_v17 = vstv %s434_s4  ;;  %vm233_vm4 = vcmask 0  }
  0x15   :  { %v282_v5 = vpack.c.bf16 %v101_v3, %v100_v2  ;;  %v103_v6 = vld [vmem:[#allocation4 + $0x18] sm:$0xff] }
  0x16   :  { %v285_v7 = vpack.c.bf16 %v103_v6, %v102_v4  ;;  %v99_v8 = vld [vmem:[%s430_s0] sm:$0xff] }
  0x17   :  { %283 = vmatpush3.bf16.msra.mxu0 %v282_v5  ;;  %v262_v9 = vld [vmem:[%s432_s2] ss:$0 sm:$0xff] }
  0x18   :  { %284 = vmatprep.subr.bf16.mxu0 %v349_v0  ;;  %v264_v13 = vld [vmem:[%s433_s3] ss:$0 sm:$0xff]  ;;  %s352_s3 = smov [#allocation7]  }
  0x19   :  { %v200_v26 = vld [vmem:[%s435_s5] sm:$0xff]  ;;  %s241_s4 = sshll.u32 %s352_s3, 4  ;;  %s242_s4 = int_to_ptr.vmem [resolvable:$true] %s241_s4 }
  0x1a   :  { %s320_s5 = scalar_lea.vmem %s242_s4, 16  ;;  %s324_s18 = scalar_lea.vmem %s242_s4, 32 }
  0x1b   :  { %286 = vmatpush3.bf16.msra.mxu0 %v285_v7  ;;  %v218_v36 = vld [vmem:[#allocation2] sm:$0xff]  ;;  %p321_p8 = scmp.ne.s32.totalorder %s242_s4, %s320_s5  ;;  %p325_p9 = scmp.lt.s32.totalorder %s242_s4, %s242_s4 }
  0x1c   :  { %p326_p10 = scmp.lt.s32.totalorder %s324_s18, %s320_s5 }
  0x1e   :  { %279 = vmatmul.mubr.msk.f32.vlgmr.msra.gmra.mrb[0].mxu0 %vm111_vm2, %v99_v8  ;;  %p327_p11 = por %p326_p10, %p325_p9 }
  0x20   :  { %p328_p12 = pnand %p327_p11, %p321_p8 }
  0xf1   :  { %v181_v10 = vpop.f32.mrb[0].mxu0 }
  0xf2   :  { %v182_v11 = vadd.f32 %v262_v9, %v181_v10  ;;  %v280_v12 = vpop.f32.mrb[1].mxu0 }
  0xf4   :  { %v185_v14 = vmax.f32 %v182_v11, 0.0 }
  0xf6   :  { %v193_v15 = vmul.f32 %v264_v13, %v185_v14 }
  0xf8   :  { %v194_v16 = vsel %vm111_vm2, %v193_v15, 0.0 }
  0xf9   :  { %195 = vadd.xlane.f32.xlu0 %v194_v16 }
 0x186   :  { %v196_v18 = vpop.xlane.xlu0 %195 }
 0x187   :  { %v199_v19 = vadd.f32 %v198_v17, %v196_v18 }
 0x189   :  { %v204_v20 = vand.u32 2147483647, %v199_v19  ;;  %v201_v28 = vmax.f32 %v199_v19, 0.0  ;;  %v202_v29 = vmul.f32 %v200_v26, %v199_v19 }
 0x18b   :  { %v205_v21 = vsub.f32 0.0, %v204_v20  ;;  %v203_v34 = vsub.f32 %v201_v28, %v202_v29 }
 0x18d   :  { %v206_v22 = vmul.f32 1.442695, %v205_v21 }
 0x18f   :  { %294 = vpow2.f32 %v206_v22 }
 0x199   :  { %v295_v23 = vpop.eup %294 }
 0x19a   :  { %v208_v24 = vadd.f32 1.0, %v295_v23  ;;  %v211_v25 = vmul.f32 -0.5, %v295_v23  ;;  %v214_v30 = vand.u32 2147483647, %v295_v23 }
 0x19c   :  { %296 = vlog2.f32 %v208_v24  ;;  %v212_v27 = vadd.f32 1.0, %v211_v25  ;;  %vm215_vm3 = vcmp.lt.f32.partialorder %v214_v30, 0.0004427343 }
 0x19e   :  { %v213_v33 = vmul.f32 %v295_v23, %v212_v27 }
 0x1a6   :  { %v297_v31 = vpop.eup %296 }
 0x1a7   :  { %v210_v32 = vmul.f32 0.6931472, %v297_v31 }
 0x1a9   :  { %v216_v35 = vsel %vm215_vm3, %v213_v33, %v210_v32 }
 0x1aa   :  { %v217_v37 = vadd.f32 %v216_v35, %v203_v34 }
 0x1ac   :  { %v219_v38 = vadd.f32 %v218_v36, %v217_v37 }
 0x1ae   :  { %221 = vst.msk [vmem:[#allocation2] sm:$0xff] %vm97_vm0, %v219_v38 }
 0x1b5   :  { %v225_v39 = vld [vmem:[#allocation2] sm:$0xff] }
 0x1b6   :  { %v226_v40 = vsel %vm97_vm0, %v225_v39, 0.0 }
 0x1b7   :  { %v227_v41 = vrot.slane %v226_v40, 4 }
 0x1b9   :  { %v228_v42 = vadd.f32 %v227_v41, %v226_v40 }
 0x1bb   :  { %v229_v43 = vrot.slane %v228_v42, 2 }
 0x1bd   :  { %v230_v44 = vadd.f32 %v229_v43, %v228_v42 }
 0x1bf   :  { %v231_v45 = vrot.slane %v230_v44, 1 }
 0x1c1   :  { %v232_v46 = vadd.f32 %v231_v45, %v230_v44 }
 0x1c3   :  { %234 = vst.msk [vmem:[#allocation7] sm:$0x1] %vm233_vm4, %v232_v46 }
 0x1c4   :  { %331 = shalt.err (!%p328_p12)
}
 0x1c5   :  { %s332_s21 = scalar_lea.hbm %s436_s6, 16 }
 0x1c6   :  { %p333_p13 = scmp.ne.s32.totalorder %s436_s6, %s332_s21  ;;  %p336_p0 = scmp.lt.u32.totalorder %s332_s21, %s436_s6 }
 0x1c8   :  { %p338_p1 = pnand %p336_p0, %p333_p13 }
 0x1ca   :  { %341 = shalt.err (!%p338_p1)
}
 0x1cb   :  { %244 = dma.vmem_to_hbm [thread:$0]  %s242_s4, 16, %s436_s6, [#allocation6]  }
 0x1cc   :  { %344 = dma.done.wait [#allocation6], 16  }
 0x1cd   :  { %345 = vsyncadd [#allocation6], 4294967280 }
 0x1ce   :  { %248 = vsyncpa [#allocation5], 1 }
 0x1cf   :  { %249 = vsyncpa [#allocation6], 1 }

</bundles_post_ra>
